<compile_context>
chip_gen: v6e
topology: v6e:2x2x1
jax: 0.10.0
libtpu: 0.0.40
codegen_flags: <defaults>
</compile_context>

<pallas_src>
import functools

import jax
import jax.numpy as jnp
import numpy as np
from jax import lax
from jax.experimental import pallas as pl
from jax.experimental.pallas import tpu as pltpu

KSIZE = 7  # SAM spatial conv kernel size (padding = 3)


def _am2_kernel(x_ref, w1t_ref, w2t_ref, t_ref, o_ref):
    # x_ref:   (BB, C, HW)   VMEM block (lane-dense)
    # w1t_ref: (C, MID)      VMEM (CAM f1 weight, transposed)
    # w2t_ref: (MID, C)      VMEM (CAM f2 weight, transposed)
    # t_ref:   (2*HW, HW)    VMEM (SAM conv as a Toeplitz matrix; rows 0..HW-1
    #                              act on the mean map, rows HW.. on the max map)
    # o_ref:   (BB, C, HW)   VMEM
    x = x_ref[...]  # (BB, C, HW) float32

    # ---------------- CAM1: channel attention ----------------
    avg_c = jnp.mean(x, axis=2)  # (BB, C)   lane reduce
    max_c = jnp.max(x, axis=2)   # (BB, C)
    w1t = w1t_ref[...]           # (C, MID)
    w2t = w2t_ref[...]           # (MID, C)
    h_avg = jnp.maximum(jnp.dot(avg_c, w1t, preferred_element_type=jnp.float32), 0.0)
    h_max = jnp.maximum(jnp.dot(max_c, w1t, preferred_element_type=jnp.float32), 0.0)
    g = h_avg + h_max                                                   # (BB, MID)
    ch_scale = jax.nn.sigmoid(
        jnp.dot(g, w2t, preferred_element_type=jnp.float32))            # (BB, C)

    # ---------------- SAM: spatial attention (one MXU matmul) ----------------
    mean_s = jnp.mean(x, axis=1)  # (BB, HW)  sublane reduce over C
    max_s = jnp.max(x, axis=1)    # (BB, HW)
    stacked = jnp.concatenate([mean_s, max_s], axis=-1)                 # (BB, 2*HW)
    conv = jnp.dot(stacked, t_ref[...], preferred_element_type=jnp.float32)  # (BB, HW)
    sp_scale = jax.nn.sigmoid(conv)                                     # (BB, HW)

    # ---------------- AM2: fused residual  o = x + x*ch + x*sp ----------------
    o_ref[...] = x * (1.0 + ch_scale[:, :, None] + sp_scale[:, None, :])


@functools.lru_cache(maxsize=None)
def _toeplitz_indices(H, W, K):
    """Static scatter indices mapping each conv tap to (src_pixel, dst_pixel)."""
    P = K // 2
    rows, cols, taps = [], [], []
    for h in range(H):
        for w in range(W):
            q = h * W + w
            for kh in range(K):
                for kw in range(K):
                    ih, iw = h + kh - P, w + kw - P
                    if 0 <= ih < H and 0 <= iw < W:
                        rows.append(ih * W + iw)
                        cols.append(q)
                        taps.append(kh * K + kw)
    return (np.asarray(rows, np.int32),
            np.asarray(cols, np.int32),
            np.asarray(taps, np.int32))


def am2_pallas(x, w1, w2, wsam):
    B, C, H, W = x.shape
    MID = w1.shape[0]
    HW = H * W
    K = KSIZE

    # Lane-dense layout for the kernel.
    x_flat = x.reshape(B, C, HW).astype(jnp.float32)
    w1t = jnp.transpose(w1).astype(jnp.float32)   # (C, MID)
    w2t = jnp.transpose(w2).astype(jnp.float32)   # (MID, C)

    # Build the (2*HW, HW) Toeplitz matrix from the 7x7 SAM weights.
    rows, cols, taps = _toeplitz_indices(H, W, K)
    wsam2 = wsam.reshape(2, K * K).astype(jnp.float32)
    t_mat = jnp.zeros((2 * HW, HW), jnp.float32)
    t_mat = t_mat.at[rows, cols].add(wsam2[0, taps])        # mean-map taps
    t_mat = t_mat.at[rows + HW, cols].add(wsam2[1, taps])   # max-map taps

    # Batch blocking: two 'parallel' grid steps when possible (v7x dual-TC),
    # otherwise one batch element per step.
    if B > 1 and B % 2 == 0:
        BB = B // 2
    else:
        BB = 1
    grid = (B // BB,)

    out_flat = pl.pallas_call(
        _am2_kernel,
        out_shape=jax.ShapeDtypeStruct((B, C, HW), jnp.float32),
        grid=grid,
        in_specs=[
            pl.BlockSpec((BB, C, HW), lambda b: (b, 0, 0)),     # x (lane-dense)
            pl.BlockSpec((C, MID), lambda b: (0, 0)),           # f1 weight^T
            pl.BlockSpec((MID, C), lambda b: (0, 0)),           # f2 weight^T
            pl.BlockSpec((2 * HW, HW), lambda b: (0, 0)),       # SAM Toeplitz matrix
        ],
        out_specs=pl.BlockSpec((BB, C, HW), lambda b: (b, 0, 0)),
        input_output_aliases={0: 0},                            # o reuses x_flat's HBM buffer
        compiler_params=pltpu.CompilerParams(
            dimension_semantics=("parallel",),                  # 2 TCs on v7x; harmless elsewhere
        ),
        cost_estimate=pl.CostEstimate(
            flops=int(B * (2 * 2 * HW * HW + 6 * C * HW + 4 * C * MID)),
            transcendentals=int(B * (C + HW)),
            bytes_accessed=int(2 * B * C * HW * 4 + 2 * HW * HW * 4),
        ),
    )(x_flat, w1t, w2t, t_mat)

    return out_flat.reshape(B, C, H, W)


def am2_reference(x, w1, w2, wsam):
    """Pure-JAX reference matching the PyTorch forward semantics."""
    # CAM1
    avg = jnp.mean(x, axis=(2, 3), keepdims=True)  # (B, C, 1, 1)
    mx = jnp.max(x, axis=(2, 3), keepdims=True)

    def mlp(s):
        h = jnp.maximum(jnp.einsum("oc,bcij->boij", w1, s), 0.0)
        return jnp.einsum("co,boij->bcij", w2, h)

    ch_scale = jax.nn.sigmoid(mlp(avg) + mlp(mx))
    xc = ch_scale * x

    # SAM
    mean_s = jnp.mean(x, axis=1, keepdims=True)
    max_s = jnp.max(x, axis=1, keepdims=True)
    y = jnp.concatenate([mean_s, max_s], axis=1)  # (B, 2, H, W)
    conv = lax.conv_general_dilated(
        y, wsam.reshape(1, 2, KSIZE, KSIZE),
        window_strides=(1, 1),
        padding=[(KSIZE // 2, KSIZE // 2)] * 2,
        dimension_numbers=("NCHW", "OIHW", "NCHW"),
    )
    xs = jax.nn.sigmoid(conv) * x

    return x + xc + xs


if __name__ == "__main__":
    B, C, H, W = 2, 32, 16, 16
    RATIO = 16
    MID = C // RATIO  # 2

    key = jax.random.PRNGKey(0)
    kx, k1, k2, k3 = jax.random.split(key, 4)

    x = jax.random.normal(kx, (B, C, H, W), jnp.float32)
    w1 = jax.random.normal(k1, (MID, C), jnp.float32) * 0.2   # CAM1.f1 (1x1, no bias)
    w2 = jax.random.normal(k2, (C, MID), jnp.float32) * 0.2   # CAM1.f2 (1x1, no bias)
    wsam = jax.random.normal(k3, (2, KSIZE, KSIZE), jnp.float32) * 0.1  # SAM.conv

    ref = jax.block_until_ready(am2_reference(x, w1, w2, wsam))
    out = jax.block_until_ready(am2_pallas(x, w1, w2, wsam))

    np.testing.assert_allclose(np.asarray(out), np.asarray(ref), rtol=1e-4, atol=1e-4)
    print("KERNEL_OK")
</pallas_src>

<mosaic_0001>
module attributes {stable_mosaic.version = 11 : i64} {
  func.func @_am2_kernel(%arg0: i32, %arg1: memref<1x32x256xf32, #tpu.memory_space<vmem>>, %arg2: memref<32x2xf32, #tpu.memory_space<vmem>>, %arg3: memref<2x32xf32, #tpu.memory_space<vmem>>, %arg4: memref<512x256xf32, #tpu.memory_space<vmem>>, %arg5: memref<1x32x256xf32, #tpu.memory_space<vmem>>) attributes {dimension_semantics = [#tpu.dimension_semantics<parallel>], iteration_bounds = array<i64: 2>, scalar_prefetch = 0 : i64, scratch_operands = 0 : i64, tpu.core_type = #tpu.core_type<tc>, window_params = [{transform_indices = @transform_0, window_bounds = array<i64: 1, 32, 256>}, {pipeline_mode = #tpu.pipeline_mode<synchronous>, transform_indices = @transform_1, window_bounds = array<i64: 32, 2>}, {pipeline_mode = #tpu.pipeline_mode<synchronous>, transform_indices = @transform_2, window_bounds = array<i64: 2, 32>}, {pipeline_mode = #tpu.pipeline_mode<synchronous>, transform_indices = @transform_3, window_bounds = array<i64: 512, 256>}, {transform_indices = @transform_4, window_bounds = array<i64: 1, 32, 256>}]} {
    %c0 = arith.constant 0 : index
    %c0_0 = arith.constant 0 : index
    %c0_1 = arith.constant 0 : index
    %0 = vector.load %arg1[%c0, %c0_0, %c0_1] : memref<1x32x256xf32, #tpu.memory_space<vmem>>, vector<1x32x256xf32>
    %cst = arith.constant dense<0.000000e+00> : vector<1x32xf32>
    %1 = vector.multi_reduction <add>, %0, %cst [2] : vector<1x32x256xf32> to vector<1x32xf32>
    %cst_2 = arith.constant 2.560000e+02 : f32
    %2 = vector.broadcast %cst_2 : f32 to vector<1x32xf32>
    %3 = arith.divf %1, %2 : vector<1x32xf32>
    %cst_3 = arith.constant dense<0xFF800000> : vector<1x32xf32>
    %4 = vector.multi_reduction <maximumf>, %0, %cst_3 [2] : vector<1x32x256xf32> to vector<1x32xf32>
    %c0_4 = arith.constant 0 : index
    %c0_5 = arith.constant 0 : index
    %5 = vector.load %arg2[%c0_4, %c0_5] : memref<32x2xf32, #tpu.memory_space<vmem>>, vector<32x2xf32>
    %c0_6 = arith.constant 0 : index
    %c0_7 = arith.constant 0 : index
    %6 = vector.load %arg3[%c0_6, %c0_7] : memref<2x32xf32, #tpu.memory_space<vmem>>, vector<2x32xf32>
    %cst_8 = arith.constant dense<0.000000e+00> : vector<1x2xf32>
    %7 = tpu.matmul %3, %5, %cst_8 {dimension_numbers = #tpu.dot_dimension_numbers<[1], [0], [0], [1], [0, 0, 1, 1], [], []>} : vector<1x32xf32>, vector<32x2xf32>, vector<1x2xf32> -> vector<1x2xf32>
    %cst_9 = arith.constant 0.000000e+00 : f32
    %8 = vector.broadcast %cst_9 : f32 to vector<1x2xf32>
    %9 = arith.maximumf %7, %8 : vector<1x2xf32>
    %cst_10 = arith.constant dense<0.000000e+00> : vector<1x2xf32>
    %10 = tpu.matmul %4, %5, %cst_10 {dimension_numbers = #tpu.dot_dimension_numbers<[1], [0], [0], [1], [0, 0, 1, 1], [], []>} : vector<1x32xf32>, vector<32x2xf32>, vector<1x2xf32> -> vector<1x2xf32>
    %cst_11 = arith.constant 0.000000e+00 : f32
    %11 = vector.broadcast %cst_11 : f32 to vector<1x2xf32>
    %12 = arith.maximumf %10, %11 : vector<1x2xf32>
    %13 = arith.addf %9, %12 : vector<1x2xf32>
    %cst_12 = arith.constant dense<0.000000e+00> : vector<1x32xf32>
    %14 = tpu.matmul %13, %6, %cst_12 {dimension_numbers = #tpu.dot_dimension_numbers<[1], [0], [0], [1], [0, 0, 1, 1], [], []>} : vector<1x2xf32>, vector<2x32xf32>, vector<1x32xf32> -> vector<1x32xf32>
    %15 = arith.negf %14 : vector<1x32xf32>
    %16 = math.exp %15 : vector<1x32xf32>
    %cst_13 = arith.constant 1.000000e+00 : f32
    %17 = vector.broadcast %cst_13 : f32 to vector<1x32xf32>
    %18 = arith.addf %17, %16 : vector<1x32xf32>
    %19 = arith.divf %17, %18 : vector<1x32xf32>
    %cst_14 = arith.constant dense<0.000000e+00> : vector<1x256xf32>
    %20 = vector.multi_reduction <add>, %0, %cst_14 [1] : vector<1x32x256xf32> to vector<1x256xf32>
    %cst_15 = arith.constant 3.200000e+01 : f32
    %21 = vector.broadcast %cst_15 : f32 to vector<1x256xf32>
    %22 = arith.divf %20, %21 : vector<1x256xf32>
    %cst_16 = arith.constant dense<0xFF800000> : vector<1x256xf32>
    %23 = vector.multi_reduction <maximumf>, %0, %cst_16 [1] : vector<1x32x256xf32> to vector<1x256xf32>
    %24 = tpu.concatenate %22, %23 in 1 : vector<1x256xf32>, vector<1x256xf32> -> vector<1x512xf32>
    %c0_17 = arith.constant 0 : index
    %c0_18 = arith.constant 0 : index
    %25 = vector.load %arg4[%c0_17, %c0_18] : memref<512x256xf32, #tpu.memory_space<vmem>>, vector<512x256xf32>
    %cst_19 = arith.constant dense<0.000000e+00> : vector<1x256xf32>
    %26 = tpu.matmul %24, %25, %cst_19 {dimension_numbers = #tpu.dot_dimension_numbers<[1], [0], [0], [1], [0, 0, 1, 1], [], []>} : vector<1x512xf32>, vector<512x256xf32>, vector<1x256xf32> -> vector<1x256xf32>
    %27 = arith.negf %26 : vector<1x256xf32>
    %28 = math.exp %27 : vector<1x256xf32>
    %cst_20 = arith.constant 1.000000e+00 : f32
    %29 = vector.broadcast %cst_20 : f32 to vector<1x256xf32>
    %30 = arith.addf %29, %28 : vector<1x256xf32>
    %31 = arith.divf %29, %30 : vector<1x256xf32>
    %32 = vector.shape_cast %19 : vector<1x32xf32> to vector<1x32x1xf32>
    %cst_21 = arith.constant 1.000000e+00 : f32
    %33 = vector.broadcast %cst_21 : f32 to vector<1x32x1xf32>
    %34 = arith.addf %33, %32 : vector<1x32x1xf32>
    %35 = vector.shape_cast %31 : vector<1x256xf32> to vector<1x1x256xf32>
    %36 = vector.broadcast %34 : vector<1x32x1xf32> to vector<1x32x256xf32>
    %37 = vector.broadcast %35 : vector<1x1x256xf32> to vector<1x32x256xf32>
    %38 = arith.addf %36, %37 : vector<1x32x256xf32>
    %39 = arith.mulf %0, %38 : vector<1x32x256xf32>
    %c0_22 = arith.constant 0 : index
    %c0_23 = arith.constant 0 : index
    %c0_24 = arith.constant 0 : index
    %40 = vector.load %arg5[%c0_22, %c0_23, %c0_24] : memref<1x32x256xf32, #tpu.memory_space<vmem>>, vector<1x32x256xf32>
    tpu.vector_store %arg5[%c0_22, %c0_23, %c0_24], %39 {strides = array<i32>} : memref<1x32x256xf32, #tpu.memory_space<vmem>>, vector<1x32x256xf32>,
    return
  }
  func.func @transform_0(%arg0: i32) -> (i32, i32, i32) {
    %c0_i32 = arith.constant 0 : i32
    %c0_i32_0 = arith.constant 0 : i32
    %c0_i32_1 = arith.constant 0 : i32
    return %arg0, %c0_i32, %c0_i32_0 : i32, i32, i32
  }
  func.func @transform_1(%arg0: i32) -> (i32, i32) {
    %c0_i32 = arith.constant 0 : i32
    %c0_i32_0 = arith.constant 0 : i32
    %c0_i32_1 = arith.constant 0 : i32
    return %c0_i32, %c0_i32_0 : i32, i32
  }
  func.func @transform_2(%arg0: i32) -> (i32, i32) {
    %c0_i32 = arith.constant 0 : i32
    %c0_i32_0 = arith.constant 0 : i32
    %c0_i32_1 = arith.constant 0 : i32
    return %c0_i32, %c0_i32_0 : i32, i32
  }
  func.func @transform_3(%arg0: i32) -> (i32, i32) {
    %c0_i32 = arith.constant 0 : i32
    %c0_i32_0 = arith.constant 0 : i32
    %c0_i32_1 = arith.constant 0 : i32
    return %c0_i32, %c0_i32_0 : i32, i32
  }
  func.func @transform_4(%arg0: i32) -> (i32, i32, i32) {
    %c0_i32 = arith.constant 0 : i32
    %c0_i32_0 = arith.constant 0 : i32
    %c0_i32_1 = arith.constant 0 : i32
    return %arg0, %c0_i32, %c0_i32_0 : i32, i32, i32
  }
}

</mosaic_0001>

<bundles_post_ra>
// kernel: tpu_custom_call.1
= control target key start
LH: loop header
LB: loop body
LE: loop exit
PB: predicated region body
PF: predicated region fallthrough
CT: control target
= control target key end

     0   :  { %9 = vsyncpa [#allocation3], 0  ;;  %s1613_s0 = inlined_call_operand.hbm [shape: f32[2,32,256], index: 0, kind: input, shape index: {}, may-alias: {0,4}]   ;;  %s1614_s1 = inlined_call_operand.vmem [shape: f32[32,2], index: 1, kind: input, shape index: {}]   ;;  %s1615_s2 = inlined_call_operand.vmem [shape: f32[2,32], index: 2, kind: input, shape index: {}]   ;;  %s1616_s3 = inlined_call_operand.hbm [shape: f32[512,256], index: 3, kind: input, shape index: {}]   ;;  %s1617_s4 = inlined_call_operand.hbm [shape: f32[2,32,256], index: 4, kind: output, shape index: {}, may-alias: {0,4}]  }
   0x1   :  { %11 = vsyncpa [#allocation3 + $0x1], 0 }
   0x2   :  { %12 = vsyncpa [#allocation6], 0 }
   0x3   :  { %13 = vsyncpa [#allocation4], 0 }
   0x4   :  { %15 = vsyncpa [#allocation4 + $0x1], 0  ;;  %s1329_s15 = smov 0   ;;  %s1331_s16 = smov 0  }
   0x5   :  { %s1333_s17 = smov 0   ;;  %s1335_s18 = smov 0  }
   0x6 LB: > { %s1350_s19 = sadd.s32 4294967295, %s1293_s18   ;;  %s1032_s20 = sadd.s32 4294967294, %s1293_s18   ;;  %s1293_s18 = sphi %s1335_s18, %s1639_s18   ;;  %s1289_s17 = sphi %s1333_s17, %s1638_s17   ;;  %s1285_s16 = sphi %s1331_s16, %s1637_s16   ;;  %s1281_s15 = sphi %s1329_s15, %s1636_s15  }
   0x7   : > { %p41_p0 = scmp.ne.s32.totalorder %s1285_s16, %s1281_s15  ;;  %p1618_p1 = scmp.eq.s32.totalorder %s1350_s19, 0 }
   0x8   : > { %p134_p3 = scmp.eq.s32.totalorder %s1032_s20, 1  ;;  %p1033_p5 = scmp.ge.s32.totalorder %s1293_s18, 1 }
   0x9   : > { %p1359_p4 = por %p1618_p1, %p41_p0  ;;  %p141_p7 = scmp.lt.s32.totalorder %s1293_s18, 3 }
   0xa   : > { %p1364_p6 = por %p134_p3, %p41_p0  ;;  %s1295_s24 = smov [#allocation5]  }
   0xb   : > { %s1622_s21 = scalar_select %p1359_p4, 1, 0 }
   0xc   : > { %s1623_s22 = scalar_select %p1364_p6, 1, 0 }
   0xd   : > { %p1369_p8 = pnand %p1033_p5, %p141_p7  ;;  %s159_s25 = sshll.u32 %s1295_s24, 4  ;;  %s160_s25 = int_to_ptr.vmem [resolvable:$true] %s159_s25 }
   0xe   : > { %s1383_s27 = sadd.s32 1, %s1293_s18   ;;  %s28_s28 = sadd.s32 1, %s1289_s17 }
   0xf   : > { %s1624_s23 = scalar_select %p1369_p8, 1, 0 }
  0x10   : > { %p1104_p9 = pneg %p1369_p8  ;;  %s25_s29 = ssub.s32 %s1293_s18, %s1383_s27 }
  0x11   : > { %s1182_s30 = scalar_lea.vmem %s160_s25, 16384  ;;  %p1190_p5 = scmp.lt.s32.totalorder %s160_s25, %s160_s25 }
  0x12   : > { %p1378_p11 = pnand %p1104_p9, %p1618_p1  ;;  %p1183_p13 = scmp.ne.s32.totalorder %s160_s25, %s1182_s30 }
  0x13   : > { %p1191_p7 = scmp.lt.s32.totalorder %s1182_s30, %s1182_s30 }
  0x14   : > { %p1173_p12 = pneg %p1378_p11 }
  0x15   : > { %p1192_p10 = por %p1191_p7, %p1190_p5 }
  0x16   : > { %p1185_p0 = pnand %p1183_p13, %p1173_p12 }
  0x18   : > { %p1186_p3 = pneg %p1185_p0 }
  0x1a   : > { %p1193_p2 = pnand %p1192_p10, %p1186_p3 }
  0x1c   : > { %1196 = shalt.err (!%p1193_p2)
}
  0x1d   : > { %s1296_s5 = smov 256   ;;  %s1297_s6 = smov 16  }
  0x1e   : > { %1107 = dma.hbm_to_vmem [thread:$0]  (!%p1378_p11), %s1616_s3, 16384, %s160_s25, [#allocation6], %s1296_s5, %s1296_s5, %s1297_s6  }
  0x1f   : > { %p26_p2 = scmp.eq.s32.totalorder %s25_s29, 0  ;;  %p35_p9 = scmp.ne.s32.totalorder %s1289_s17, %s1285_s16 }
  0x20   : > { %p36_p10 = scmp.eq.s32.totalorder %s1293_s18, 0  ;;  %p1117_p12 = scmp.lt.s32.totalorder %s1293_s18, 2 }
  0x21   : > { %s1403_s9 = scalar_select %p26_p2, %s1289_s17, %s28_s28  }
  0x22   : > { %p37_p13 = por %p36_p10, %p35_p9  ;;  %p1626_p0 = scmp.eq.s32.totalorder %s1350_s19, 1 }
  0x23   : > { %s173_s11 = sand.u32 1, %s1289_s17   ;;  %s1055_s12 = sshll.u32 %s1293_s18, 10 }
  0x24   : > { %p1407_p3 = por %p1626_p0, %p35_p9  ;;  %s1036_s13 = sshll.u32 %s173_s11, 6 }
  0x25   : > { %s1416_s24 = scalar_lea.hbm %s1613_s0, %s1055_s12  ;;  %s177_s25 = scalar_lea.vmem [#allocation2], %s1036_s13 }
  0x26   : > { %s1627_s10 = scalar_select %p1407_p3, 1, 0 }
  0x27   : > { %s184_s26 = sshll.u32 %s177_s25, 4  ;;  %p1418_p11 = pnand %p1117_p12, %p37_p13  ;;  %s1422_s26 = int_to_ptr.vmem [resolvable:$true] %s184_s26 }
  0x28   : > { %s1424_s29 = scalar_lea.sflag [#allocation3], %s173_s11  ;;  %s1197_s30 = scalar_lea.hbm %s1416_s24, 1024 }
  0x29   : > { %p1198_p5 = scmp.ne.s32.totalorder %s1416_s24, %s1197_s30  ;;  %p1199_p7 = pneg %p1418_p11 }
  0x2a   : > { %s1202_s12 = scalar_lea.hbm %s1613_s0, 2048  ;;  %p1203_p10 = scmp.lt.s32.totalorder %s1416_s24, %s1613_s0 }
  0x2b   : > { %p1200_p2 = pnand %p1199_p7, %p1198_p5  ;;  %p1204_p12 = scmp.lt.s32.totalorder %s1202_s12, %s1197_s30 }
  0x2d   : > { %p1201_p9 = pneg %p1200_p2  ;;  %p1205_p13 = por %p1204_p12, %p1203_p10 }
  0x2f   : > { %p1206_p0 = pnand %p1205_p13, %p1201_p9 }
  0x31   : > { %1209 = shalt.err (!%p1206_p0)
}
  0x32   : > { %s1210_s11 = scalar_lea.vmem %s1422_s26, 1024  ;;  %s1298_s20 = smov [#allocation2]  }
  0x33   : > { %p1211_p1 = scmp.ne.s32.totalorder %s1422_s26, %s1210_s11  ;;  %s1215_s25 = sshll.u32 %s1298_s20, 4  ;;  %s1216_s25 = int_to_ptr.vmem [resolvable:$false] %s1215_s25 }
  0x34   : > { %s1217_s7 = scalar_lea.vmem %s1216_s25, 2048  ;;  %p1218_p2 = scmp.lt.s32.totalorder %s1422_s26, %s1216_s25 }
  0x35   : > { %p1213_p6 = pnand %p1211_p1, %p1199_p7  ;;  %p1219_p3 = scmp.lt.s32.totalorder %s1217_s7, %s1210_s11 }
  0x37   : > { %p1214_p5 = pneg %p1213_p6  ;;  %p1220_p4 = por %p1219_p3, %p1218_p2 }
  0x39   : > { %p1221_p8 = pnand %p1220_p4, %p1214_p5 }
  0x3b   : > { %1224 = shalt.err (!%p1221_p8)
}
  0x3c   : > { %1111 = dma.hbm_to_vmem [thread:$0]  (!%p1418_p11), %s1416_s24, 1024, %s1422_s26, %s1424_s29, %s1296_s5, %s1296_s5, %s1297_s6  }
  0x3d   : > { %p1629_p1 = scmp.ne.s32.totalorder %s1624_s23, 0 }
  0x3e   : > { %s1451_s30 = sand.u32 (!%p1629_p1), 1, %s1285_s16   ;;  %p1630_p4 = scmp.ne.s32.totalorder (!%p1629_p1), %s1622_s21, 0 }
  0x3f   : > { %196 = sbr.rel (%p1629_p1) target bundleno = 797 (0x31d), region = 36  ;;  %s1040_s8 = sshll.u32 (!%p1629_p1), %s1451_s30, 6 }
  0x40   : > { %s199_s12 = scalar_lea.sflag (!%p1629_p1), [#allocation3], %s1451_s30  ;;  %s202_s28 = scalar_lea.vmem (!%p1629_p1), [#allocation2], %s1040_s8 }
  0x44   : > { %1268 = dma.done.wait (%p1630_p4), %s199_s12, 1024  }
  0x45   : > { %1270 = vsyncadd (%p1630_p4), %s199_s12, 4294966272  ;;  %p1631_p6 = scmp.eq.s32.totalorder %s1350_s19, 0 }
  0x47   : > { %1272 = dma.done.wait (%p1631_p6), [#allocation6], 16384   ;;  %p1632_p8 = pmov %p1631_p6 }
  0x48   : > { %v1465_v0 = vld [vmem:[%s202_s28 + $0x20] sm:$0xff]  ;;  %v1467_v1 = vld [vmem:[%s202_s28 + $0x28] sm:$0xff]  ;;  %v1475_v5 = vld [vmem:[%s202_s28 + $0x30] sm:$0xff]  ;;  %v1299_v16 = vmov 0.0   ;;  %vm1300_vm0 = vmmov 0   ;;  %v277_v21 = vlaneseq  ;;  %vm288_vm1 = vcmask 130112  }
  0x49   : > { %1274 = vsyncadd (%p1632_p8), [#allocation6], 4294950912  ;;  %v1469_v2 = vld [vmem:[%s202_s28] sm:$0xff]  ;;  %v245_v3 = vadd.f32 %v1467_v1, %v1465_v0  ;;  %v1473_v4 = vld [vmem:[%s202_s28 + $0x8] sm:$0xff]  ;;  %v262_v15 = vmax.f32 %v1465_v0, %v1467_v1  ;;  %1069 = vmatprep.subr.mxu0 %v1299_v16  ;;  %1080 = vmatprep.subr.mxu1 %v1299_v16  ;;  %vm295_vm2 = vcmask 195712   ;;  %vm302_vm3 = vcmask 261312  }
  0x4a   : > { %v1477_v6 = vld [vmem:[%s202_s28 + $0x38] sm:$0xff]  ;;  %v239_v7 = vadd.f32 %v1473_v4, %v1469_v2  ;;  %v1481_v8 = vld [vmem:[%s202_s28 + $0x10] sm:$0xff]  ;;  %v256_v13 = vmax.f32 %v1469_v2, %v1473_v4  ;;  %v269_v19 = vld [vmem:[%s1614_s1 + $0x8] sm:$0xff]  ;;  %1077 = vmatprep.mubr.msk.f32.mxu0 %vm1300_vm0, %v1299_v16  ;;  %1088 = vmatprep.mubr.msk.f32.mxu1 %vm1300_vm0, %v1299_v16  ;;  %v278_v22 = vand.u32 127, %v277_v21  ;;  %v1522_v23 = vshrl.u32 %v277_v21, 7  ;;  %s230_s20 = scalar_lea.vmem [#allocation7], %s1040_s8 }
  0x4b   : > { %v1483_v9 = vld [vmem:[%s202_s28 + $0x18] sm:$0xff]  ;;  %246 = vadd.xlane.f32.xlu1 %v245_v3  ;;  %v248_v10 = vadd.f32 %v1477_v6, %v1475_v5  ;;  %v265_v14 = vmax.f32 %v1475_v5, %v1477_v6  ;;  %v270_v18 = vld [vmem:[%s1614_s1 + $0x10] sm:$0xff]  ;;  %v268_v20 = vld [vmem:[%s1614_s1] sm:$0xff]  ;;  %vm304_vm4 = vcmask 261120   ;;  %vm479_vm5 = vcmask 1041408   ;;  %s1056_s25 = sshll.u32 %s1350_s19, 10 }
  0x4c   : > { %240 = vadd.xlane.f32.xlu0 %v239_v7  ;;  %v242_v11 = vadd.f32 %v1483_v9, %v1481_v8  ;;  %v259_v12 = vmax.f32 %v1481_v8, %v1483_v9  ;;  %v271_v17 = vld [vmem:[%s1614_s1 + $0x18] sm:$0xff]  ;;  %v297_v25 = vadd.s32 4294967272, %v278_v22  ;;  %v283_v26 = vadd.s32 4294967288, %v278_v22  ;;  %v272_v57 = vld [vmem:[%s1615_s2] sm:$0x3]  ;;  %v628_v60 = vld [vmem:[#allocation5 + $0xf0] sm:$0xff]  ;;  %s1566_s28 = scalar_lea.hbm %s1617_s4, %s1056_s25 }
  0x4d   : > { %1070 = vmatpush3.msra.mxu0 %v271_v17  ;;  %1081 = vmatpush3.msra.mxu1 %v271_v17  ;;  %v290_v27 = vadd.s32 4294967280, %v278_v22  ;;  %v281_v29 = vsub.s32 %v278_v22, %v1522_v23  ;;  %v629_v58 = vld [vmem:[#allocation5 + $0xf8] sm:$0xff]  ;;  %v627_v61 = vld [vmem:[#allocation5 + $0xe8] sm:$0xff]  ;;  %v626_v62 = vld [vmem:[#allocation5 + $0xe0] sm:$0xff]  ;;  %vm475_vm6 = vcmask 15360   ;;  %s949_s7 = sshll.u32 %s230_s20, 4  ;;  %s1568_s7 = int_to_ptr.vmem [resolvable:$true] %s949_s7 }
  0x4e   : > { %1071 = vmatprep.subr.mxu0 %v1299_v16  ;;  %1082 = vmatprep.subr.mxu1 %v1299_v16  ;;  %v300_v31 = vsub.s32 %v297_v25, %v1522_v23  ;;  %v286_v33 = vsub.s32 %v283_v26, %v1522_v23  ;;  %v693_v59 = vld [vmem:[#allocation5 + $0x2f8] sm:$0xff]  ;;  %v624_v3 = vld [vmem:[#allocation5 + $0xd0] sm:$0xff]  ;;  %v623_v7 = vld [vmem:[#allocation5 + $0xc8] sm:$0xff]  ;;  %s936_s19 = scalar_lea.sflag [#allocation4], %s1451_s30  ;;  %s1225_s21 = scalar_lea.vmem %s1568_s7, 1024 }
  0x4f   : > { %249 = vadd.xlane.f32.xlu1 %v248_v10  ;;  %1072 = vmatpush3.msra.mxu0 %v270_v18  ;;  %v293_v34 = vsub.s32 %v290_v27, %v1522_v23  ;;  %v625_v63 = vld [vmem:[#allocation5 + $0xd8] sm:$0xff]  ;;  %v622_v10 = vld [vmem:[#allocation5 + $0xc0] sm:$0xff]  ;;  %v615_v17 = vld [vmem:[#allocation5 + $0x88] sm:$0xff]  ;;  %p1226_p3 = scmp.ne.s32.totalorder %s1568_s7, %s1225_s21  ;;  %p1633_p11 = scmp.ne.s32.totalorder %s1627_s10, 0 }
  0x50   : > { %243 = vadd.xlane.f32.xlu0 %v242_v11  ;;  %1083 = vmatpush3.msra.mxu1 %v270_v18  ;;  %v621_v11 = vld [vmem:[#allocation5 + $0xb8] sm:$0xff]  ;;  %v614_v18 = vld [vmem:[#allocation5 + $0x80] sm:$0xff]  ;;  %v611_v21 = vld [vmem:[#allocation5 + $0x68] sm:$0xff]  ;;  %s1301_s23 = smov [#allocation7]  }
  0x51   : > { %1073 = vmatprep.subr.mxu0 %v1299_v16  ;;  %1084 = vmatprep.subr.mxu1 %v1299_v16  ;;  %v610_v22 = vld [vmem:[#allocation5 + $0x60] sm:$0xff]  ;;  %v608_v25 = vld [vmem:[#allocation5 + $0x50] sm:$0xff]  ;;  %v607_v26 = vld [vmem:[#allocation5 + $0x48] sm:$0xff]  ;;  %p1227_p7 = pnand %p1226_p3, %p1633_p11  ;;  %s1229_s5 = sshll.u32 %s1301_s23, 4  ;;  %s1230_s5 = int_to_ptr.vmem [resolvable:$false] %s1229_s5 }
  0x52   : > { %1074 = vmatpush3.msra.mxu0 %v269_v19  ;;  %1085 = vmatpush3.msra.mxu1 %v269_v19  ;;  %v613_v19 = vld [vmem:[#allocation5 + $0x78] sm:$0xff]  ;;  %v606_v27 = vld [vmem:[#allocation5 + $0x40] sm:$0xff]  ;;  %s1231_s6 = scalar_lea.vmem %s1230_s5, 2048  ;;  %p1232_p10 = scmp.lt.s32.totalorder %s1568_s7, %s1230_s5 }
  0x53   : > { %260 = vmax.xlane.f32.xlu1 %v259_v12  ;;  %1075 = vmatprep.subr.mxu0 %v1299_v16  ;;  %v620_v12 = vld [vmem:[#allocation5 + $0xb0] sm:$0xff]  ;;  %p1228_p9 = pneg %p1227_p7  ;;  %p1233_p12 = scmp.lt.s32.totalorder %s1231_s6, %s1225_s21 }
  0x54   : > { %257 = vmax.xlane.f32.xlu0 %v256_v13  ;;  %1086 = vmatprep.subr.mxu1 %v1299_v16  ;;  %v619_v13 = vld [vmem:[#allocation5 + $0xa8] sm:$0xff] }
  0x55   : > { %1076 = vmatpush3.msra.mxu0 %v268_v20  ;;  %1087 = vmatpush3.msra.mxu1 %v268_v20  ;;  %v612_v20 = vld [vmem:[#allocation5 + $0x70] sm:$0xff]  ;;  %p1234_p13 = por %p1233_p12, %p1232_p10 }
  0x56   : > { %1091 = vmatprep.subr.mxu0 %v1299_v16  ;;  %726 = vmatprep.subr.mxu1 %v629_v58  ;;  %v639_v58 = vld [vmem:[#allocation5 + $0x148] sm:$0xff] }
  0x57   : > { %266 = vmax.xlane.f32.xlu1 %v265_v14  ;;  %v618_v14 = vld [vmem:[#allocation5 + $0xa0] sm:$0xff]  ;;  %p1235_p0 = pnand %p1234_p13, %p1228_p9 }
  0x58   : > { %263 = vmax.xlane.f32.xlu0 %v262_v15  ;;  %v617_v15 = vld [vmem:[#allocation5 + $0x98] sm:$0xff] }
  0xd4   : > { %v247_v24 = vpop.xlane.xlu1 %246 }
  0xd5   : > { %v241_v28 = vpop.xlane.xlu0 %240  ;;  %v254_v35 = vmul.f32 0.00390625, %v247_v24  ;;  %v609_v24 = vld [vmem:[#allocation5 + $0x58] sm:$0xff] }
  0xd6   : > { %v252_v30 = vmul.f32 0.00390625, %v241_v28  ;;  %v605_v28 = vld [vmem:[#allocation5 + $0x38] sm:$0xff] }
  0xd7   : > { %v294_v43 = vrot.slane %v254_v35, %v293_v34  ;;  %v598_v35 = vld [vmem:[#allocation5] sm:$0xff] }
  0xd8   : > { %v250_v32 = vpop.xlane.xlu1 %249  ;;  %v282_v39 = vrot.slane %v252_v30, %v281_v29  ;;  %v603_v30 = vld [vmem:[#allocation5 + $0x28] sm:$0xff] }
  0xd9   : > { %v255_v36 = vmul.f32 0.00390625, %v250_v32  ;;  %v244_v37 = vpop.xlane.xlu0 %243  ;;  %v601_v32 = vld [vmem:[#allocation5 + $0x18] sm:$0xff] }
  0xda   : > { %v253_v38 = vmul.f32 0.00390625, %v244_v37  ;;  %v660_v37 = vld [vmem:[#allocation5 + $0x1f0] sm:$0xff] }
  0xdb   : > { %v301_v40 = vrot.slane %v255_v36, %v300_v31  ;;  %v661_v36 = vld [vmem:[#allocation5 + $0x1f8] sm:$0xff] }
  0xdc   : > { %v287_v41 = vrot.slane %v253_v38, %v286_v33  ;;  %v261_v42 = vpop.xlane.xlu1 %260  ;;  %v659_v38 = vld [vmem:[#allocation5 + $0x1e8] sm:$0xff] }
  0xdd   : > { %v258_v44 = vpop.xlane.xlu0 %257  ;;  %v389_v46 = vrot.slane %v261_v42, %v286_v33  ;;  %v600_v33 = vld [vmem:[#allocation5 + $0x10] sm:$0xff]  ;;  %v655_v42 = vld [vmem:[#allocation5 + $0x1c8] sm:$0xff] }
  0xde   : > { %v289_v45 = vsel %vm288_vm1, %v287_v41, %v282_v39  ;;  %v385_v47 = vrot.slane %v258_v44, %v281_v29  ;;  %v604_v29 = vld [vmem:[#allocation5 + $0x30] sm:$0xff]  ;;  %v658_v39 = vld [vmem:[#allocation5 + $0x1e0] sm:$0xff]  ;;  %v653_v44 = vld [vmem:[#allocation5 + $0x1b8] sm:$0xff] }
  0xdf   : > { %v296_v48 = vsel %vm295_vm2, %v294_v43, %v289_v45  ;;  %v656_v41 = vld [vmem:[#allocation5 + $0x1d0] sm:$0xff]  ;;  %v654_v43 = vld [vmem:[#allocation5 + $0x1c0] sm:$0xff] }
  0xe0   : > { %v303_v49 = vsel %vm302_vm3, %v301_v40, %v296_v48  ;;  %v267_v50 = vpop.xlane.xlu1 %266  ;;  %v390_v54 = vsel %vm288_vm1, %v389_v46, %v385_v47  ;;  %v657_v40 = vld [vmem:[#allocation5 + $0x1d8] sm:$0xff]  ;;  %v652_v45 = vld [vmem:[#allocation5 + $0x1b0] sm:$0xff]  ;;  %v651_v46 = vld [vmem:[#allocation5 + $0x1a8] sm:$0xff] }
  0xe1   : > { %1078 = vmatmul.mubr.msk.f32.vlgmr.msra.gmra.mxu0 %vm304_vm4, %v303_v49  ;;  %v264_v51 = vpop.xlane.xlu0 %263  ;;  %v399_v52 = vrot.slane %v267_v50, %v300_v31  ;;  %v602_v31 = vld [vmem:[#allocation5 + $0x20] sm:$0xff]  ;;  %v649_v48 = vld [vmem:[#allocation5 + $0x198] sm:$0xff]  ;;  %v648_v49 = vld [vmem:[#allocation5 + $0x190] sm:$0xff] }
  0xe2   : > { %v394_v53 = vrot.slane %v264_v51, %v293_v34  ;;  %1093 = vmatprep.mubr.msk.f32.mxu0 %vm1300_vm0, %v1299_v16  ;;  %1092 = vmatpush3.msk.msra.mxu0 %vm479_vm5, %v272_v57  ;;  %v616_v16 = vld [vmem:[#allocation5 + $0x90] sm:$0xff]  ;;  %v599_v34 = vld [vmem:[#allocation5 + $0x8] sm:$0xff]  ;;  %v650_v47 = vld [vmem:[#allocation5 + $0x1a0] sm:$0xff] }
  0xe3   : > { %797 = vmatprep.subr.mxu0 %v693_v59  ;;  %v647_v50 = vld [vmem:[#allocation5 + $0x188] sm:$0xff]  ;;  %v646_v51 = vld [vmem:[#allocation5 + $0x180] sm:$0xff]  ;;  %v640_v57 = vld [vmem:[#allocation5 + $0x150] sm:$0xff] }
  0xe4   : > { %v395_v55 = vsel %vm295_vm2, %v394_v53, %v390_v54  ;;  %v644_v53 = vld [vmem:[#allocation5 + $0x170] sm:$0xff]  ;;  %v643_v54 = vld [vmem:[#allocation5 + $0x168] sm:$0xff]  ;;  %v638_v59 = vld [vmem:[#allocation5 + $0x140] sm:$0xff] }
  0xe5   : > { %v400_v56 = vsel %vm302_vm3, %v399_v52, %v395_v55  ;;  %v645_v52 = vld [vmem:[#allocation5 + $0x178] sm:$0xff]  ;;  %v642_v55 = vld [vmem:[#allocation5 + $0x160] sm:$0xff] }
  0xe6   : > { %1089 = vmatmul.mubr.msk.f32.vlgmr.msra.gmra.mxu1 %vm304_vm4, %v400_v56  ;;  %v641_v56 = vld [vmem:[#allocation5 + $0x158] sm:$0xff] }
  0xe7   : > { %727 = vmatpush1.msra.mxu1 %v628_v60  ;;  %v637_v60 = vld [vmem:[#allocation5 + $0x138] sm:$0xff] }
  0xe8   : > { %728 = vmatprep.subr.mxu1 %v627_v61  ;;  %v636_v61 = vld [vmem:[#allocation5 + $0x130] sm:$0xff] }
  0xe9   : > { %729 = vmatpush1.msra.mxu1 %v626_v62  ;;  %v635_v62 = vld [vmem:[#allocation5 + $0x128] sm:$0xff] }
  0xea   : > { %730 = vmatprep.subr.mxu1 %v625_v63  ;;  %v568_v63 = vadd.f32 %v1483_v9, %v1473_v4 }
  0xeb   : > { %731 = vmatpush1.msra.mxu1 %v624_v3  ;;  %v634_v3 = vld [vmem:[#allocation5 + $0x120] sm:$0xff] }
  0xec   : > { %732 = vmatprep.subr.mxu1 %v623_v7  ;;  %v559_v7 = vadd.f32 %v1481_v8, %v1469_v2 }
  0xed   : > { %733 = vmatpush1.msra.mxu1 %v622_v10  ;;  %v633_v10 = vld [vmem:[#allocation5 + $0x118] sm:$0xff] }
  0xee   : > { %734 = vmatprep.subr.mxu1 %v621_v11  ;;  %v632_v11 = vld [vmem:[#allocation5 + $0x110] sm:$0xff] }
  0xef   : > { %735 = vmatpush1.msra.mxu1 %v620_v12  ;;  %v631_v12 = vld [vmem:[#allocation5 + $0x108] sm:$0xff] }
  0xf0   : > { %736 = vmatprep.subr.mxu1 %v619_v13  ;;  %v630_v13 = vld [vmem:[#allocation5 + $0x100] sm:$0xff] }
  0xf1   : > { %737 = vmatpush1.msra.mxu1 %v618_v14  ;;  %v569_v14 = vadd.f32 %v568_v63, %v1467_v1  ;;  %v678_v63 = vld [vmem:[#allocation5 + $0x280] sm:$0xff] }
  0xf2   : > { %738 = vmatprep.subr.mxu1 %v617_v15  ;;  %v560_v15 = vadd.f32 %v559_v7, %v1465_v0  ;;  %v676_v7 = vld [vmem:[#allocation5 + $0x270] sm:$0xff] }
  0xf3   : > { %739 = vmatpush1.msra.mxu1 %v616_v16  ;;  %v570_v16 = vadd.f32 %v569_v14, %v1477_v6  ;;  %v671_v14 = vld [vmem:[#allocation5 + $0x248] sm:$0xff] }
  0xf4   : > { %740 = vmatprep.subr.mxu1 %v615_v17  ;;  %v561_v17 = vadd.f32 %v560_v15, %v1475_v5  ;;  %v670_v15 = vld [vmem:[#allocation5 + $0x240] sm:$0xff] }
  0xf5   : > { %741 = vmatpush1.msra.mxu1 %v614_v18  ;;  %v571_v18 = vrot.slane %v570_v16, 4 }
  0xf6   : > { %742 = vmatprep.subr.mxu1 %v613_v19  ;;  %v562_v19 = vrot.slane %v561_v17, 4 }
  0xf7   : > { %743 = vmatpush1.msra.mxu1 %v612_v20  ;;  %v572_v20 = vadd.f32 %v571_v18, %v570_v16  ;;  %v669_v16 = vld [vmem:[#allocation5 + $0x238] sm:$0xff]  ;;  %v667_v18 = vld [vmem:[#allocation5 + $0x228] sm:$0xff] }
  0xf8   : > { %744 = vmatprep.subr.mxu1 %v611_v21  ;;  %v563_v21 = vadd.f32 %v562_v19, %v561_v17  ;;  %v668_v17 = vld [vmem:[#allocation5 + $0x230] sm:$0xff]  ;;  %v666_v19 = vld [vmem:[#allocation5 + $0x220] sm:$0xff] }
  0xf9   : > { %745 = vmatpush1.msra.mxu1 %v610_v22  ;;  %v573_v22 = vrot.slane %v572_v20, 2 }
  0xfa   : > { %746 = vmatprep.subr.mxu1 %v609_v24  ;;  %v564_v24 = vrot.slane %v563_v21, 2 }
  0xfb   : > { %747 = vmatpush1.msra.mxu1 %v608_v25  ;;  %v574_v25 = vadd.f32 %v573_v22, %v572_v20  ;;  %v665_v20 = vld [vmem:[#allocation5 + $0x218] sm:$0xff]  ;;  %v663_v22 = vld [vmem:[#allocation5 + $0x208] sm:$0xff] }
  0xfc   : > { %748 = vmatprep.subr.mxu1 %v607_v26  ;;  %v565_v26 = vadd.f32 %v564_v24, %v563_v21  ;;  %v664_v21 = vld [vmem:[#allocation5 + $0x210] sm:$0xff]  ;;  %v662_v24 = vld [vmem:[#allocation5 + $0x200] sm:$0xff] }
  0xfd   : > { %749 = vmatpush1.msra.mxu1 %v606_v27  ;;  %v575_v27 = vrot.slane %v574_v25, 1 }
  0xfe   : > { %750 = vmatprep.subr.mxu1 %v605_v28  ;;  %v566_v28 = vrot.slane %v565_v26, 1 }
  0xff   : > { %751 = vmatpush1.msra.mxu1 %v604_v29  ;;  %v576_v29 = vadd.f32 %v575_v27, %v574_v25  ;;  %v725_v25 = vld [vmem:[#allocation5 + $0x3f8] sm:$0xff]  ;;  %v723_v27 = vld [vmem:[#allocation5 + $0x3e8] sm:$0xff] }
 0x100   : > { %752 = vmatprep.subr.mxu1 %v603_v30  ;;  %v567_v30 = vadd.f32 %v566_v28, %v565_v26  ;;  %v724_v26 = vld [vmem:[#allocation5 + $0x3f0] sm:$0xff]  ;;  %v580_v28 = vmax.f32 %v1469_v2, %v1465_v0 }
 0x101   : > { %753 = vmatpush1.msra.mxu1 %v602_v31  ;;  %v579_v31 = vmul.f32 0.03125, %v576_v29  ;;  %v581_v29 = vmax.f32 %v1481_v8, %v1475_v5 }
 0x102   : > { %754 = vmatprep.subr.mxu1 %v601_v32  ;;  %v578_v32 = vmul.f32 0.03125, %v567_v30  ;;  %v722_v30 = vld [vmem:[#allocation5 + $0x3e0] sm:$0xff] }
 0x103   : > { %755 = vmatpush1.msra.mxu1 %v600_v33  ;;  %790 = vmatprep.mubr.f32.mxu1 %v579_v31  ;;  %v589_v33 = vmax.f32 %v1473_v4, %v1467_v1  ;;  %v721_v31 = vld [vmem:[#allocation5 + $0x3d8] sm:$0xff] }
 0x104   : > { %756 = vmatprep.subr.mxu1 %v599_v34  ;;  %v590_v34 = vmax.f32 %v1483_v9, %v1477_v6 }
 0x105   : > { %757 = vmatpush1.msra.mxu1 %v598_v35 }
 0x106   : > { %758 = vmatprep.subr.mxu1 %v661_v36  ;;  %v591_v35 = vmax.f32 %v589_v33, %v590_v34  ;;  %v719_v33 = vld [vmem:[#allocation5 + $0x3c8] sm:$0xff]  ;;  %v718_v34 = vld [vmem:[#allocation5 + $0x3c0] sm:$0xff] }
 0x107   : > { %759 = vmatpush2.msra.mxu1 %v660_v37 }
 0x108   : > { %760 = vmatprep.subr.mxu1 %v659_v38  ;;  %v592_v36 = vrot.slane %v591_v35, 4 }
 0x109   : > { %761 = vmatpush2.msra.mxu1 %v658_v39 }
 0x10a   : > { %762 = vmatprep.subr.mxu1 %v657_v40  ;;  %v593_v37 = vmax.f32 %v591_v35, %v592_v36  ;;  %v582_v35 = vmax.f32 %v580_v28, %v581_v29  ;;  %v717_v36 = vld [vmem:[#allocation5 + $0x3b8] sm:$0xff] }
 0x10b   : > { %763 = vmatpush2.msra.mxu1 %v656_v41 }
 0x10c   : > { %764 = vmatprep.subr.mxu1 %v655_v42  ;;  %v594_v38 = vrot.slane %v593_v37, 2 }
 0x10d   : > { %765 = vmatpush2.msra.mxu1 %v654_v43 }
 0x10e   : > { %766 = vmatprep.subr.mxu1 %v653_v44  ;;  %v595_v39 = vmax.f32 %v593_v37, %v594_v38  ;;  %v716_v37 = vld [vmem:[#allocation5 + $0x3b0] sm:$0xff]  ;;  %v715_v38 = vld [vmem:[#allocation5 + $0x3a8] sm:$0xff] }
 0x10f   : > { %767 = vmatpush2.msra.mxu1 %v652_v45 }
 0x110   : > { %768 = vmatprep.subr.mxu1 %v651_v46  ;;  %v596_v42 = vrot.slane %v595_v39, 1 }
 0x111   : > { %769 = vmatpush2.msra.mxu1 %v650_v47 }
 0x112   : > { %770 = vmatprep.subr.mxu1 %v649_v48  ;;  %v597_v47 = vmax.f32 %v595_v39, %v596_v42  ;;  %v714_v39 = vld [vmem:[#allocation5 + $0x3a0] sm:$0xff]  ;;  %v712_v42 = vld [vmem:[#allocation5 + $0x390] sm:$0xff] }
 0x113   : > { %771 = vmatpush2.msra.mxu1 %v648_v49  ;;  %v692_v49 = vld [vmem:[#allocation5 + $0x2f0] sm:$0xff] }
 0x114   : > { %772 = vmatprep.subr.mxu1 %v647_v50  ;;  %v691_v50 = vld [vmem:[#allocation5 + $0x2e8] sm:$0xff] }
 0x115   : > { %773 = vmatpush2.msra.mxu1 %v646_v51  ;;  %v690_v51 = vld [vmem:[#allocation5 + $0x2e0] sm:$0xff] }
 0x116   : > { %774 = vmatprep.subr.mxu1 %v645_v52  ;;  %v689_v52 = vld [vmem:[#allocation5 + $0x2d8] sm:$0xff] }
 0x117   : > { %775 = vmatpush2.msra.mxu1 %v644_v53  ;;  %v688_v53 = vld [vmem:[#allocation5 + $0x2d0] sm:$0xff] }
 0x118   : > { %776 = vmatprep.subr.mxu1 %v643_v54  ;;  %v687_v54 = vld [vmem:[#allocation5 + $0x2c8] sm:$0xff] }
 0x119   : > { %777 = vmatpush2.msra.mxu1 %v642_v55  ;;  %v686_v55 = vld [vmem:[#allocation5 + $0x2c0] sm:$0xff] }
 0x11a   : > { %778 = vmatprep.subr.mxu1 %v641_v56  ;;  %v685_v56 = vld [vmem:[#allocation5 + $0x2b8] sm:$0xff] }
 0x11b   : > { %779 = vmatpush2.msra.mxu1 %v640_v57  ;;  %v684_v57 = vld [vmem:[#allocation5 + $0x2b0] sm:$0xff] }
 0x11c   : > { %780 = vmatprep.subr.mxu1 %v639_v58  ;;  %v683_v58 = vld [vmem:[#allocation5 + $0x2a8] sm:$0xff] }
 0x11d   : > { %781 = vmatpush2.msra.mxu1 %v638_v59  ;;  %v682_v59 = vld [vmem:[#allocation5 + $0x2a0] sm:$0xff] }
 0x11e   : > { %782 = vmatprep.subr.mxu1 %v637_v60  ;;  %v681_v60 = vld [vmem:[#allocation5 + $0x298] sm:$0xff] }
 0x11f   : > { %783 = vmatpush2.msra.mxu1 %v636_v61  ;;  %v680_v61 = vld [vmem:[#allocation5 + $0x290] sm:$0xff] }
 0x120   : > { %784 = vmatprep.subr.mxu1 %v635_v62  ;;  %v679_v62 = vld [vmem:[#allocation5 + $0x288] sm:$0xff] }
 0x121   : > { %785 = vmatpush2.msra.mxu1 %v634_v3  ;;  %v677_v3 = vld [vmem:[#allocation5 + $0x278] sm:$0xff] }
 0x122   : > { %786 = vmatprep.subr.mxu1 %v633_v10  ;;  %v675_v10 = vld [vmem:[#allocation5 + $0x268] sm:$0xff] }
 0x123   : > { %787 = vmatpush2.msra.mxu1 %v632_v11  ;;  %v674_v11 = vld [vmem:[#allocation5 + $0x260] sm:$0xff] }
 0x124   : > { %788 = vmatprep.subr.mxu1 %v631_v12  ;;  %v673_v12 = vld [vmem:[#allocation5 + $0x258] sm:$0xff] }
 0x125   : > { %789 = vmatpush2.msra.mxu1 %v630_v13  ;;  %v672_v13 = vld [vmem:[#allocation5 + $0x250] sm:$0xff] }
 0x126   : > { %791 = vmatmul.mubr.f32.vlgmr.msra.gmra.mxu1 %v578_v32  ;;  %v720_v32 = vld [vmem:[#allocation5 + $0x3d0] sm:$0xff] }
 0x1a1   : > { %v373_v40 = vpop.f32.mrf.mxu0 }
 0x1a2   : > { %v377_v44 = vmax.f32 %v373_v40, 0.0  ;;  %v583_v40 = vrot.slane %v582_v35, 4 }
 0x1a3   : > { %v1079_v41 = vpop.f32.mrf.mxu0 }
 0x1a4   : > { %v713_v41 = vld [vmem:[#allocation5 + $0x398] sm:$0xff] }
 0x1a6   : > { %v469_v43 = vpop.f32.mrf.mxu1 }
 0x1a7   : > { %v473_v45 = vmax.f32 %v469_v43, 0.0  ;;  %v711_v43 = vld [vmem:[#allocation5 + $0x388] sm:$0xff] }
 0x1a8   : > { %v1090_v46 = vpop.f32.mrf.mxu1 }
 0x1a9   : > { %v474_v48 = vadd.f32 %v473_v45, %v377_v44  ;;  %v710_v44 = vld [vmem:[#allocation5 + $0x380] sm:$0xff]  ;;  %v584_v45 = vmax.f32 %v582_v35, %v583_v40  ;;  %v709_v46 = vld [vmem:[#allocation5 + $0x378] sm:$0xff] }
 0x1ab   : > { %1094 = vmatmul.mubr.msk.f32.vlgmr.msra.gmra.mxu0 %vm475_vm6, %v474_v48  ;;  %v707_v48 = vld [vmem:[#allocation5 + $0x368] sm:$0xff] }
 0x1ac   : > { %798 = vmatpush1.msra.mxu0 %v692_v49  ;;  %861 = vmatprep.mubr.f32.mxu0 %v597_v47  ;;  %v708_v47 = vld [vmem:[#allocation5 + $0x370] sm:$0xff]  ;;  %v706_v49 = vld [vmem:[#allocation5 + $0x360] sm:$0xff] }
 0x1ad   : > { %799 = vmatprep.subr.mxu0 %v691_v50  ;;  %v585_v50 = vrot.slane %v584_v45, 2 }
 0x1ae   : > { %800 = vmatpush1.msra.mxu0 %v690_v51  ;;  %v705_v51 = vld [vmem:[#allocation5 + $0x358] sm:$0xff] }
 0x1af   : > { %801 = vmatprep.subr.mxu0 %v689_v52  ;;  %v704_v52 = vld [vmem:[#allocation5 + $0x350] sm:$0xff] }
 0x1b0   : > { %802 = vmatpush1.msra.mxu0 %v688_v53  ;;  %v703_v53 = vld [vmem:[#allocation5 + $0x348] sm:$0xff] }
 0x1b1   : > { %803 = vmatprep.subr.mxu0 %v687_v54  ;;  %v702_v54 = vld [vmem:[#allocation5 + $0x340] sm:$0xff] }
 0x1b2   : > { %804 = vmatpush1.msra.mxu0 %v686_v55  ;;  %v586_v55 = vmax.f32 %v584_v45, %v585_v50 }
 0x1b3   : > { %805 = vmatprep.subr.mxu0 %v685_v56  ;;  %v701_v56 = vld [vmem:[#allocation5 + $0x338] sm:$0xff] }
 0x1b4   : > { %806 = vmatpush1.msra.mxu0 %v684_v57  ;;  %v700_v57 = vld [vmem:[#allocation5 + $0x330] sm:$0xff] }
 0x1b5   : > { %807 = vmatprep.subr.mxu0 %v683_v58  ;;  %v699_v58 = vld [vmem:[#allocation5 + $0x328] sm:$0xff] }
 0x1b6   : > { %808 = vmatpush1.msra.mxu0 %v682_v59  ;;  %v698_v59 = vld [vmem:[#allocation5 + $0x320] sm:$0xff] }
 0x1b7   : > { %809 = vmatprep.subr.mxu0 %v681_v60  ;;  %v587_v60 = vrot.slane %v586_v55, 1 }
 0x1b8   : > { %810 = vmatpush1.msra.mxu0 %v680_v61  ;;  %v697_v61 = vld [vmem:[#allocation5 + $0x318] sm:$0xff] }
 0x1b9   : > { %811 = vmatprep.subr.mxu0 %v679_v62  ;;  %v696_v62 = vld [vmem:[#allocation5 + $0x310] sm:$0xff] }
 0x1ba   : > { %812 = vmatpush1.msra.mxu0 %v678_v63  ;;  %v695_v63 = vld [vmem:[#allocation5 + $0x308] sm:$0xff] }
 0x1bb   : > { %813 = vmatprep.subr.mxu0 %v677_v3  ;;  %v694_v3 = vld [vmem:[#allocation5 + $0x300] sm:$0xff] }
 0x1bc   : > { %814 = vmatpush1.msra.mxu0 %v676_v7  ;;  %v588_v7 = vmax.f32 %v586_v55, %v587_v60 }
 0x1bd   : > { %815 = vmatprep.subr.mxu0 %v675_v10 }
 0x1be   : > { %816 = vmatpush1.msra.mxu0 %v674_v11 }
 0x1bf   : > { %817 = vmatprep.subr.mxu0 %v673_v12 }
 0x1c0   : > { %818 = vmatpush1.msra.mxu0 %v672_v13 }
 0x1c1   : > { %819 = vmatprep.subr.mxu0 %v671_v14 }
 0x1c2   : > { %820 = vmatpush1.msra.mxu0 %v670_v15  ;;  %v882_v15 = vsub.s32 0, %v1522_v23 }
 0x1c3   : > { %821 = vmatprep.subr.mxu0 %v669_v16 }
 0x1c4   : > { %822 = vmatpush1.msra.mxu0 %v668_v17 }
 0x1c5   : > { %823 = vmatprep.subr.mxu0 %v667_v18 }
 0x1c6   : > { %824 = vmatpush1.msra.mxu0 %v666_v19 }
 0x1c7   : > { %825 = vmatprep.subr.mxu0 %v665_v20 }
 0x1c8   : > { %826 = vmatpush1.msra.mxu0 %v664_v21 }
 0x1c9   : > { %827 = vmatprep.subr.mxu0 %v663_v22 }
 0x1ca   : > { %828 = vmatpush1.msra.mxu0 %v662_v24 }
 0x1cb   : > { %829 = vmatprep.subr.mxu0 %v725_v25 }
 0x1cc   : > { %830 = vmatpush2.msra.mxu0 %v724_v26 }
 0x1cd   : > { %831 = vmatprep.subr.mxu0 %v723_v27 }
 0x1ce   : > { %832 = vmatpush2.msra.mxu0 %v722_v30 }
 0x1cf   : > { %833 = vmatprep.subr.mxu0 %v721_v31 }
 0x1d0   : > { %834 = vmatpush2.msra.mxu0 %v720_v32 }
 0x1d1   : > { %835 = vmatprep.subr.mxu0 %v719_v33 }
 0x1d2   : > { %836 = vmatpush2.msra.mxu0 %v718_v34 }
 0x1d3   : > { %837 = vmatprep.subr.mxu0 %v717_v36 }
 0x1d4   : > { %838 = vmatpush2.msra.mxu0 %v716_v37 }
 0x1d5   : > { %839 = vmatprep.subr.mxu0 %v715_v38 }
 0x1d6   : > { %840 = vmatpush2.msra.mxu0 %v714_v39 }
 0x1d7   : > { %841 = vmatprep.subr.mxu0 %v713_v41 }
 0x1d8   : > { %842 = vmatpush2.msra.mxu0 %v712_v42 }
 0x1d9   : > { %843 = vmatprep.subr.mxu0 %v711_v43 }
 0x1da   : > { %844 = vmatpush2.msra.mxu0 %v710_v44 }
 0x1db   : > { %845 = vmatprep.subr.mxu0 %v709_v46 }
 0x1dc   : > { %846 = vmatpush2.msra.mxu0 %v708_v47 }
 0x1dd   : > { %847 = vmatprep.subr.mxu0 %v707_v48 }
 0x1de   : > { %848 = vmatpush2.msra.mxu0 %v706_v49 }
 0x1df   : > { %849 = vmatprep.subr.mxu0 %v705_v51 }
 0x1e0   : > { %850 = vmatpush2.msra.mxu0 %v704_v52 }
 0x1e1   : > { %851 = vmatprep.subr.mxu0 %v703_v53 }
 0x1e2   : > { %852 = vmatpush2.msra.mxu0 %v702_v54 }
 0x1e3   : > { %853 = vmatprep.subr.mxu0 %v701_v56 }
 0x1e4   : > { %854 = vmatpush2.msra.mxu0 %v700_v57 }
 0x1e5   : > { %855 = vmatprep.subr.mxu0 %v699_v58 }
 0x1e6   : > { %856 = vmatpush2.msra.mxu0 %v698_v59  ;;  %v792_v18 = vpop.f32.mrf.mxu1 }
 0x1e7   : > { %857 = vmatprep.subr.mxu0 %v697_v61 }
 0x1e8   : > { %858 = vmatpush2.msra.mxu0 %v696_v62  ;;  %v794_v20 = vpop.f32.mrf.mxu1 }
 0x1e9   : > { %859 = vmatprep.subr.mxu0 %v695_v63 }
 0x1ea   : > { %860 = vmatpush2.msra.mxu0 %v694_v3 }
 0x1eb   : > { %862 = vmatmul.mubr.f32.vlgmr.msra.gmra.mxu0 %v588_v7 }
 0x26b   : > { %v549_v10 = vpop.f32.mrf.mxu0 }
 0x26c   : > { %v1047_v11 = vmul.f32 -1.442695, %v549_v10 }
 0x26d   : > { %v1095_v12 = vpop.f32.mrf.mxu0 }
 0x26e   : > { %1159 = vpow2.f32 %v1047_v11 }
 0x27b   : > { %v1160_v13 = vpop.eup %1159 }
 0x27c   : > { %v556_v14 = vadd.f32 1.0, %v1160_v13 }
 0x27e   : > { %1161 = vrcp.f32 %v556_v14 }
 0x28b   : > { %v1162_v16 = vpop.eup %1161 }
 0x28c   : > { %v883_v17 = vrot.slane %v1162_v16, %v882_v15 }
 0x28e   : > { %889 = vbcast.lane.b32.xlu1 %v883_v17, 264  ;;  %885 = vbcast.lane.b32.xlu0 %v883_v17, 256 }
 0x292   : > { %893 = vbcast.lane.b32.xlu1 %v883_v17, 272 }
 0x296   : > { %897 = vbcast.lane.b32.xlu1 %v883_v17, 280 }
 0x2ab   : > { %v863_v19 = vpop.f32.mrf.mxu0 }
 0x2ac   : > { %v864_v22 = vadd.f32 %v863_v19, %v792_v18 }
 0x2ad   : > { %v865_v21 = vpop.f32.mrf.mxu0 }
 0x2ae   : > { %v866_v24 = vadd.f32 %v865_v21, %v794_v20  ;;  %v1048_v25 = vmul.f32 -1.442695, %v864_v22 }
 0x2b0   : > { %v1049_v26 = vmul.f32 -1.442695, %v866_v24  ;;  %1163 = vpow2.f32 %v1048_v25 }
 0x2b2   : > { %1165 = vpow2.f32 %v1049_v26 }
 0x2bd   : > { %v1164_v27 = vpop.eup %1163 }
 0x2be   : > { %v874_v29 = vadd.f32 1.0, %v1164_v27 }
 0x2bf   : > { %v1166_v28 = vpop.eup %1165 }
 0x2c0   : > { %v875_v23 = vadd.f32 1.0, %v1166_v28  ;;  %1167 = vrcp.f32 %v874_v29 }
 0x2c2   : > { %1169 = vrcp.f32 %v875_v23 }
 0x2cd   : > { %v1168_v30 = vpop.eup %1167 }
 0x2ce   : > { %v906_v32 = vrot.slane %v1168_v30, %v882_v15 }
 0x2cf   : > { %v1170_v31 = vpop.eup %1169 }
 0x2d0   : > { %v910_v33 = vrot.slane %v1170_v31, %v882_v15 }
 0x300   : > { %v890_v34 = vpop.permute.xlu1 %889  ;;  %v886_v35 = vpop.permute.xlu0 %885 }
 0x301   : > { %v900_v36 = vadd.f32 1.0, %v890_v34  ;;  %v899_v37 = vadd.f32 1.0, %v886_v35 }
 0x303   : > { %v913_v38 = vadd.f32 %v906_v32, %v900_v36  ;;  %v914_v39 = vadd.f32 %v910_v33, %v900_v36  ;;  %v911_v40 = vadd.f32 %v906_v32, %v899_v37  ;;  %v912_v41 = vadd.f32 %v910_v33, %v899_v37 }
 0x304   : > { %v894_v42 = vpop.permute.xlu1 %893 }
 0x305   : > { %v921_v43 = vmul.f32 %v913_v38, %v1481_v8  ;;  %v922_v44 = vmul.f32 %v914_v39, %v1483_v9  ;;  %v919_v45 = vmul.f32 %v911_v40, %v1469_v2  ;;  %v920_v46 = vmul.f32 %v912_v41, %v1473_v4 }
 0x306   : > { %v901_v47 = vadd.f32 1.0, %v894_v42 }
 0x307   : > { %929 = vst [vmem:[%s230_s20 + $0x10] sm:$0xff] %v921_v43  ;;  %930 = vst [vmem:[%s230_s20 + $0x18] sm:$0xff] %v922_v44 }
 0x308   : > { %927 = vst [vmem:[%s230_s20] sm:$0xff] %v919_v45  ;;  %928 = vst [vmem:[%s230_s20 + $0x8] sm:$0xff] %v920_v46  ;;  %v915_v48 = vadd.f32 %v906_v32, %v901_v47  ;;  %v916_v49 = vadd.f32 %v910_v33, %v901_v47  ;;  %v898_v50 = vpop.permute.xlu1 %897 }
 0x309   : > { %v902_v51 = vadd.f32 1.0, %v898_v50 }
 0x30a   : > { %v923_v8 = vmul.f32 %v915_v48, %v1465_v0  ;;  %v924_v2 = vmul.f32 %v916_v49, %v1467_v1 }
 0x30b   : > { %v917_v4 = vadd.f32 %v906_v32, %v902_v51  ;;  %v918_v9 = vadd.f32 %v910_v33, %v902_v51 }
 0x30c   : > { %931 = vst [vmem:[%s230_s20 + $0x20] sm:$0xff] %v923_v8  ;;  %932 = vst [vmem:[%s230_s20 + $0x28] sm:$0xff] %v924_v2 }
 0x30d   : > { %v925_v52 = vmul.f32 %v917_v4, %v1475_v5  ;;  %v926_v0 = vmul.f32 %v918_v9, %v1477_v6 }
 0x30f   : > { %933 = vst [vmem:[%s230_s20 + $0x30] sm:$0xff] %v925_v52  ;;  %934 = vst [vmem:[%s230_s20 + $0x38] sm:$0xff] %v926_v0 }
 0x310   : > { %1238 = shalt.err (!%p1235_p0)
}
 0x311   : > { %s1239_s24 = scalar_lea.hbm %s1566_s28, 1024  ;;  %s1243_s13 = scalar_lea.hbm %s1617_s4, 2048 }
 0x312   : > { %p1240_p5 = scmp.ne.s32.totalorder %s1566_s28, %s1239_s24  ;;  %p1244_p4 = scmp.lt.s32.totalorder %s1566_s28, %s1617_s4 }
 0x313   : > { %p1245_p6 = scmp.lt.s32.totalorder %s1243_s13, %s1239_s24 }
 0x314   : > { %p1241_p2 = pnand %p1240_p5, %p1633_p11 }
 0x315   : > { %p1246_p8 = por %p1245_p6, %p1244_p4 }
 0x316   : > { %p1242_p1 = pneg %p1241_p2 }
 0x318   : > { %p1247_p3 = pnand %p1246_p8, %p1242_p1 }
 0x31a   : > { %1250 = shalt.err (!%p1247_p3)
}
 0x31b   : > { %s1302_s20 = smov 256   ;;  %s1303_s25 = smov 16  }
 0x31c   : > { %1102 = dma.vmem_to_hbm [thread:$0]  (%p1633_p11), %s1568_s7, 1024, %s1566_s28, %s936_s19, %s1302_s20, %s1302_s20, %s1303_s25  }
 0x31d PF: > { %s964_s8 = sand.u32 1, %s1281_s15   ;;  %p1634_p7 = scmp.ne.s32.totalorder %s1623_s22, 0 }
 0x31e   : > { %p1635_p9 = scmp.ge.s32.totalorder %s1293_s18, 2  ;;  %s965_s12 = scalar_lea.sflag [#allocation4], %s964_s8 }
 0x320   : > { %p1113_p10 = pnand %p1635_p9, %p1634_p7 }
 0x322   : > { %p1114_p12 = pneg %p1113_p10 }
 0x324   : > { %1276 = dma.done.wait (%p1114_p12), %s965_s12, 1024  }
 0x325   : > { %1278 = vsyncadd (%p1114_p12), %s965_s12, 4294966272  ;;  %p18_p13 = scmp.ge.s32.totalorder %s1383_s27, 4   ;;  %s1636_s15 = smov %s1285_s16 }
 0x326   : > { %s1637_s16 = smov %s1289_s17  ;;  %s1638_s17 = smov %s1403_s9 }
 0x327   : > { %s1639_s18 = smov %s1383_s27  ;;  %20 = sbr.rel (!%p18_p13) target bundleno = 6 (0x6), region = 85 }
 0x32c   :  { %970 = vsyncpa [#allocation3], 1 }
 0x32d   :  { %972 = vsyncpa [#allocation3 + $0x1], 1 }
 0x32e   :  { %973 = vsyncpa [#allocation6], 1 }
 0x32f   :  { %974 = vsyncpa [#allocation4], 1 }
 0x330   :  { %976 = vsyncpa [#allocation4 + $0x1], 1 }

</bundles_post_ra>
